<compile_context>
chip_gen: v5e
topology: v5e:2x2
jax: 0.10.0
libtpu: 0.0.40
codegen_flags: <defaults>
</compile_context>

<pallas_src>
import functools

import jax
import jax.numpy as jnp
from jax import lax
from jax.experimental import pallas as pl
from jax.experimental.pallas import tpu as pltpu

_MiB = 1024 * 1024


def _round_up(x: int, m: int) -> int:
    return (x + m - 1) // m * m


def _vmem_budget_bytes() -> int:
    """Per-generation scoped-VMEM budget for this kernel."""
    try:
        cap = int(pltpu.get_tpu_info().vmem_capacity_bytes)
    except Exception:
        cap = None
    if cap is None:
        return 64 * _MiB                       # safe on v5e/v6e/v7x
    if cap <= 64 * _MiB:                       # v7x-class: 64 MiB per TensorCore
        return max(32 * _MiB, min(44 * _MiB, cap - 16 * _MiB))
    return min(64 * _MiB, cap // 2)            # v5e / v6e: 128 MiB physical


def _choose_tiling(M, C, T, D, in_isz, out_isz, budget, split_cols):
    """Pick (row tile tm, #column/token groups n_c) fitting the VMEM budget.

    Column groups are whole tokens (LayerNorm is per token), so n_c must divide
    T.  When M fits a single row tile we prefer n_c >= 2 so the weight HBM read
    is split across both v7x TensorCores (one extra grid step elsewhere is
    negligible: ~0.35 us).
    """
    M8 = max(8, _round_up(M, 8))
    col_opts = [n for n in range(1, T + 1) if T % n == 0]
    if split_cols and T >= 2:
        pref = [n for n in col_opts if n >= 2]
        if pref:
            col_opts = pref + [1]
    for n_c in col_opts:
        tn = (T // n_c) * D
        w_bufs = 1 if n_c == 1 else 2          # resident (Buffered(1)) vs streamed
        fixed = (w_bufs * C * tn * in_isz      # weight block(s)
                 + 4 * tn * 4 + 4 * D * 4)     # bias / gamma / beta (f32)
        for tm in (512, 256, 128, 64, 32, 16, 8):
            tm = min(tm, M8)
            per_row = (2 * C * in_isz          # double-buffered x tiles
                       + 2 * tn * out_isz      # double-buffered out tiles
                       + 3 * tn * 4)           # f32 accumulator + LN temporaries
            if fixed + tm * per_row <= budget:
                return tm, n_c
    # Should be unreachable for sane shapes; never collapse to tm=8 silently.
    return min(128, M8), T


def _image_proj_kernel(x_ref, w_ref, b_ref, gamma_ref, beta_ref, o_ref, *,
                       tokens_per_block, dim, eps):
    # x_ref:     (tm, C)   compute dtype (bf16 or f32)
    # w_ref:     (C, tn)   compute dtype, tn = tokens_per_block * dim
    # b_ref:     (1, tn)   f32
    # gamma_ref: (1, D)    f32
    # beta_ref:  (1, D)    f32
    # o_ref:     (tm, tn)  output dtype -- single lane-dense 2-D store
    # One wide MXU matmul with f32 accumulation for the whole column group.
    y = jnp.dot(x_ref[...], w_ref[...], preferred_element_type=jnp.float32)
    y = y + b_ref[...]
    gamma = gamma_ref[...]                     # (1, D)
    beta = beta_ref[...]                       # (1, D)

    parts = []
    for t in range(tokens_per_block):          # static unroll (tokens are few)
        lo = t * dim
        yt = y[:, lo:lo + dim]                 # (tm, D) f32
        mean = jnp.mean(yt, axis=-1, keepdims=True)
        centered = yt - mean
        var = jnp.mean(centered * centered, axis=-1, keepdims=True)
        inv = lax.rsqrt(var + eps)
        parts.append(centered * inv * gamma + beta)
    out = parts[0] if len(parts) == 1 else jnp.concatenate(parts, axis=-1)
    o_ref[...] = out.astype(o_ref.dtype)


def image_proj_model(image_embeds, w, b, gamma, beta, *, tokens, dim, eps=1e-5,
                     compute_dtype=jnp.bfloat16, tm=None, vmem_limit_bytes=None):
    """Pallas implementation of ImageProjModel.forward.

    image_embeds: [B, N, C] or [B, C]
    w: (C, tokens*dim)   (torch Linear.weight transposed)
    b: (tokens*dim,)     gamma/beta: (dim,)
    compute_dtype: dtype fed to the MXU (default bf16; accumulation and
                   LayerNorm stay in f32).  Pass jnp.float32 for an exact path.
    Returns [B, N*tokens, dim] (or [B, tokens, dim] for 2-D input).
    """
    if image_embeds.ndim == 3:
        B, N, C = image_embeds.shape
    elif image_embeds.ndim == 2:
        B, C = image_embeds.shape
        N = 1
    else:
        raise ValueError("image_embeds must be rank 2 or 3")
    TD = tokens * dim
    assert w.shape == (C, TD), (w.shape, (C, TD))
    M = B * N

    out_dtype = image_embeds.dtype
    if compute_dtype is None:
        compute_dtype = image_embeds.dtype

    x = image_embeds.reshape(M, C).astype(compute_dtype)
    w_c = w.astype(compute_dtype)
    b2 = b.reshape(1, TD).astype(jnp.float32)
    gamma2 = gamma.reshape(1, dim).astype(jnp.float32)
    beta2 = beta.reshape(1, dim).astype(jnp.float32)

    if vmem_limit_bytes is None:
        vmem_limit_bytes = _vmem_budget_bytes()

    in_isz = jnp.dtype(compute_dtype).itemsize
    out_isz = jnp.dtype(out_dtype).itemsize
    # M = B*N is small for realistic ImageProjModel calls -> split the weight
    # over token groups so both v7x TensorCores share the HBM read.
    split_cols = _round_up(M, 8) <= 256
    tm_auto, n_c = _choose_tiling(M, C, tokens, dim, in_isz, out_isz,
                                  int(0.85 * vmem_limit_bytes), split_cols)
    if tm is None:
        tm = tm_auto
    else:
        tm = max(8, _round_up(min(tm, _round_up(M, 8)), 8))

    tokens_per_block = tokens // n_c
    tn = tokens_per_block * dim

    n_m = pl.cdiv(M, tm)
    M_pad = n_m * tm
    if M_pad != M:
        # Ragged last row tile: zero-pad rows (rows are independent under
        # LayerNorm; padded rows are dropped below).  Negligible for the small
        # M typical of this module.
        x = jnp.pad(x, ((0, M_pad - M), (0, 0)))

    kernel = functools.partial(_image_proj_kernel,
                               tokens_per_block=tokens_per_block, dim=dim, eps=eps)

    resident = pl.Buffered(1)   # single VMEM copy of grid-invariant operands
    if n_c == 1:
        w_spec = pl.BlockSpec((C, tn), lambda j, i: (0, j), pipeline_mode=resident)
        b_spec = pl.BlockSpec((1, tn), lambda j, i: (0, j), pipeline_mode=resident)
    else:
        # Streamed weight column blocks: keep default double-buffering so the
        # next group's DMA overlaps the current group's MXU work.
        w_spec = pl.BlockSpec((C, tn), lambda j, i: (0, j))
        b_spec = pl.BlockSpec((1, tn), lambda j, i: (0, j))

    out = pl.pallas_call(
        kernel,
        out_shape=jax.ShapeDtypeStruct((M_pad, TD), out_dtype),
        grid_spec=pltpu.PrefetchScalarGridSpec(
            num_scalar_prefetch=0,
            grid=(n_c, n_m),                    # token groups outer, row tiles inner
            in_specs=[
                pl.BlockSpec((tm, C), lambda j, i: (i, 0)),        # x row tile
                w_spec,                                            # weight cols
                b_spec,                                            # bias cols
                pl.BlockSpec((1, dim), lambda j, i: (0, 0),
                             pipeline_mode=resident),              # gamma
                pl.BlockSpec((1, dim), lambda j, i: (0, 0),
                             pipeline_mode=resident),              # beta
            ],
            out_specs=pl.BlockSpec((tm, tn), lambda j, i: (i, j)),
        ),
        compiler_params=pltpu.CompilerParams(
            dimension_semantics=("parallel", "parallel"),  # independent cells;
            vmem_limit_bytes=int(vmem_limit_bytes),        # megacore on v7x
        ),
    )(x, w_c, b2, gamma2, beta2)

    if M_pad != M:
        out = out[:M]                            # drop padded rows
    # rearrange '(b nt) n c -> b (nt n) c' (nt=N) == (B,N,T,D) -> (B, N*T, D)
    return out.reshape(B, N * tokens, dim)


if __name__ == "__main__":
    # Small shapes consistent with the module:
    #   clip_embeddings_dim (C)=64, cross_attention_dim (D)=64,
    #   clip_extra_context_tokens (T)=4, batch B=2, seq N=7.
    # N=7 makes M=14 non-divisible by the tile -> exercises the ragged-row path;
    # small M also exercises the token-group (column) grid split.
    B, N, C = 2, 7, 64
    D, T = 64, 4

    key = jax.random.PRNGKey(0)
    k_x, k_w, k_b, k_g, k_be = jax.random.split(key, 5)

    image_embeds = jax.random.normal(k_x, (B, N, C), dtype=jnp.float32)
    # torch Linear weight is (out, in); we store it transposed as (in, out).
    w = jax.random.normal(k_w, (C, T * D), dtype=jnp.float32) * 0.02
    b = jax.random.normal(k_b, (T * D,), dtype=jnp.float32) * 0.01
    gamma = 1.0 + 0.1 * jax.random.normal(k_g, (D,), dtype=jnp.float32)
    beta = 0.05 * jax.random.normal(k_be, (D,), dtype=jnp.float32)

    def reference(cast_dtype):
        xf = image_embeds.reshape(B * N, C)
        wf = w
        if cast_dtype is not None:
            xf = xf.astype(cast_dtype).astype(jnp.float32)
            wf = wf.astype(cast_dtype).astype(jnp.float32)
        y = xf @ wf + b
        y = y.reshape(-1, T, D)
        mu = y.mean(-1, keepdims=True)
        var = ((y - mu) ** 2).mean(-1, keepdims=True)
        y = (y - mu) / jnp.sqrt(var + 1e-5) * gamma + beta
        return y.reshape(B, N * T, D)

    # Exact f32 compute path.
    out_f32 = image_proj_model(image_embeds, w, b, gamma, beta, tokens=T, dim=D,
                               compute_dtype=jnp.float32)
    jax.block_until_ready(out_f32)
    ref_f32 = reference(None)
    assert out_f32.shape == (B, N * T, D)
    assert jnp.allclose(out_f32, ref_f32, atol=3e-4, rtol=3e-4), float(
        jnp.max(jnp.abs(out_f32 - ref_f32)))

    # Default bf16 compute path (production config: halves weight/activation HBM
    # traffic; f32 MXU accumulation + f32 LayerNorm) vs a bf16-cast reference.
    out_bf16 = image_proj_model(image_embeds, w, b, gamma, beta, tokens=T, dim=D)
    jax.block_until_ready(out_bf16)
    ref_bf16 = reference(jnp.bfloat16)
    assert out_bf16.shape == (B, N * T, D)
    assert bool(jnp.all(jnp.isfinite(out_bf16)))
    assert jnp.allclose(out_bf16.astype(jnp.float32), ref_bf16,
                        atol=2e-2, rtol=2e-2), float(
        jnp.max(jnp.abs(out_bf16.astype(jnp.float32) - ref_bf16)))

    print("KERNEL_OK")
</pallas_src>

<mosaic_0001>
module attributes {stable_mosaic.version = 11 : i64} {
  func.func @_image_proj_kernel(%arg0: i32, %arg1: i32, %arg2: memref<16x64xf32, #tpu.memory_space<vmem>>, %arg3: memref<64x128xf32, #tpu.memory_space<vmem>>, %arg4: memref<1x128xf32, #tpu.memory_space<vmem>>, %arg5: memref<1x64xf32, #tpu.memory_space<vmem>>, %arg6: memref<1x64xf32, #tpu.memory_space<vmem>>, %arg7: memref<16x128xf32, #tpu.memory_space<vmem>>) attributes {dimension_semantics = [#tpu.dimension_semantics<parallel>, #tpu.dimension_semantics<parallel>], iteration_bounds = array<i64: 2, 1>, scalar_prefetch = 0 : i64, scratch_operands = 0 : i64, tpu.core_type = #tpu.core_type<tc>, window_params = [{transform_indices = @transform_0, window_bounds = array<i64: 16, 64>}, {transform_indices = @transform_1, window_bounds = array<i64: 64, 128>}, {transform_indices = @transform_2, window_bounds = array<i64: 1, 128>}, {pipeline_mode = #tpu.pipeline_mode<synchronous>, transform_indices = @transform_3, window_bounds = array<i64: 1, 64>}, {pipeline_mode = #tpu.pipeline_mode<synchronous>, transform_indices = @transform_4, window_bounds = array<i64: 1, 64>}, {transform_indices = @transform_5, window_bounds = array<i64: 16, 128>}]} {
    %c0 = arith.constant 0 : index
    %c0_0 = arith.constant 0 : index
    %0 = vector.load %arg2[%c0, %c0_0] : memref<16x64xf32, #tpu.memory_space<vmem>>, vector<16x64xf32>
    %c0_1 = arith.constant 0 : index
    %c0_2 = arith.constant 0 : index
    %1 = vector.load %arg3[%c0_1, %c0_2] : memref<64x128xf32, #tpu.memory_space<vmem>>, vector<64x128xf32>
    %cst = arith.constant dense<0.000000e+00> : vector<16x128xf32>
    %2 = tpu.matmul %0, %1, %cst {dimension_numbers = #tpu.dot_dimension_numbers<[1], [0], [0], [1], [0, 0, 1, 1], [], []>} : vector<16x64xf32>, vector<64x128xf32>, vector<16x128xf32> -> vector<16x128xf32>
    %c0_3 = arith.constant 0 : index
    %c0_4 = arith.constant 0 : index
    %3 = vector.load %arg4[%c0_3, %c0_4] : memref<1x128xf32, #tpu.memory_space<vmem>>, vector<1x128xf32>
    %4 = vector.broadcast %3 : vector<1x128xf32> to vector<16x128xf32>
    %5 = arith.addf %2, %4 : vector<16x128xf32>
    %c0_5 = arith.constant 0 : index
    %c0_6 = arith.constant 0 : index
    %6 = vector.load %arg5[%c0_5, %c0_6] : memref<1x64xf32, #tpu.memory_space<vmem>>, vector<1x64xf32>
    %c0_7 = arith.constant 0 : index
    %c0_8 = arith.constant 0 : index
    %7 = vector.load %arg6[%c0_7, %c0_8] : memref<1x64xf32, #tpu.memory_space<vmem>>, vector<1x64xf32>
    %8 = vector.extract_strided_slice %5 {offsets = [0, 0], sizes = [16, 64], strides = [1, 1]} : vector<16x128xf32> to vector<16x64xf32>
    %cst_9 = arith.constant dense<0.000000e+00> : vector<16xf32>
    %9 = vector.multi_reduction <add>, %8, %cst_9 [1] : vector<16x64xf32> to vector<16xf32>
    %10 = vector.shape_cast %9 : vector<16xf32> to vector<16x1xf32>
    %cst_10 = arith.constant 6.400000e+01 : f32
    %11 = vector.broadcast %cst_10 : f32 to vector<16x1xf32>
    %12 = arith.divf %10, %11 : vector<16x1xf32>
    %13 = vector.broadcast %12 : vector<16x1xf32> to vector<16x64xf32>
    %14 = arith.subf %8, %13 : vector<16x64xf32>
    %15 = arith.mulf %14, %14 : vector<16x64xf32>
    %cst_11 = arith.constant dense<0.000000e+00> : vector<16xf32>
    %16 = vector.multi_reduction <add>, %15, %cst_11 [1] : vector<16x64xf32> to vector<16xf32>
    %17 = vector.shape_cast %16 : vector<16xf32> to vector<16x1xf32>
    %cst_12 = arith.constant 6.400000e+01 : f32
    %18 = vector.broadcast %cst_12 : f32 to vector<16x1xf32>
    %19 = arith.divf %17, %18 : vector<16x1xf32>
    %cst_13 = arith.constant 9.99999974E-6 : f32
    %20 = vector.broadcast %cst_13 : f32 to vector<16x1xf32>
    %21 = arith.addf %19, %20 : vector<16x1xf32>
    %22 = math.rsqrt %21 : vector<16x1xf32>
    %23 = vector.broadcast %22 : vector<16x1xf32> to vector<16x64xf32>
    %24 = arith.mulf %14, %23 : vector<16x64xf32>
    %25 = vector.broadcast %6 : vector<1x64xf32> to vector<16x64xf32>
    %26 = arith.mulf %24, %25 : vector<16x64xf32>
    %27 = vector.broadcast %7 : vector<1x64xf32> to vector<16x64xf32>
    %28 = arith.addf %26, %27 : vector<16x64xf32>
    %29 = vector.extract_strided_slice %5 {offsets = [0, 64], sizes = [16, 64], strides = [1, 1]} : vector<16x128xf32> to vector<16x64xf32>
    %cst_14 = arith.constant dense<0.000000e+00> : vector<16xf32>
    %30 = vector.multi_reduction <add>, %29, %cst_14 [1] : vector<16x64xf32> to vector<16xf32>
    %31 = vector.shape_cast %30 : vector<16xf32> to vector<16x1xf32>
    %cst_15 = arith.constant 6.400000e+01 : f32
    %32 = vector.broadcast %cst_15 : f32 to vector<16x1xf32>
    %33 = arith.divf %31, %32 : vector<16x1xf32>
    %34 = vector.broadcast %33 : vector<16x1xf32> to vector<16x64xf32>
    %35 = arith.subf %29, %34 : vector<16x64xf32>
    %36 = arith.mulf %35, %35 : vector<16x64xf32>
    %cst_16 = arith.constant dense<0.000000e+00> : vector<16xf32>
    %37 = vector.multi_reduction <add>, %36, %cst_16 [1] : vector<16x64xf32> to vector<16xf32>
    %38 = vector.shape_cast %37 : vector<16xf32> to vector<16x1xf32>
    %cst_17 = arith.constant 6.400000e+01 : f32
    %39 = vector.broadcast %cst_17 : f32 to vector<16x1xf32>
    %40 = arith.divf %38, %39 : vector<16x1xf32>
    %cst_18 = arith.constant 9.99999974E-6 : f32
    %41 = vector.broadcast %cst_18 : f32 to vector<16x1xf32>
    %42 = arith.addf %40, %41 : vector<16x1xf32>
    %43 = math.rsqrt %42 : vector<16x1xf32>
    %44 = vector.broadcast %43 : vector<16x1xf32> to vector<16x64xf32>
    %45 = arith.mulf %35, %44 : vector<16x64xf32>
    %46 = vector.broadcast %6 : vector<1x64xf32> to vector<16x64xf32>
    %47 = arith.mulf %45, %46 : vector<16x64xf32>
    %48 = vector.broadcast %7 : vector<1x64xf32> to vector<16x64xf32>
    %49 = arith.addf %47, %48 : vector<16x64xf32>
    %50 = tpu.concatenate %28, %49 in 1 : vector<16x64xf32>, vector<16x64xf32> -> vector<16x128xf32>
    %c0_19 = arith.constant 0 : index
    %c0_20 = arith.constant 0 : index
    %51 = vector.load %arg7[%c0_19, %c0_20] : memref<16x128xf32, #tpu.memory_space<vmem>>, vector<16x128xf32>
    tpu.vector_store %arg7[%c0_19, %c0_20], %50 {strides = array<i32>} : memref<16x128xf32, #tpu.memory_space<vmem>>, vector<16x128xf32>,
    return
  }
  func.func @transform_0(%arg0: i32, %arg1: i32) -> (i32, i32) {
    %c0_i32 = arith.constant 0 : i32
    %c0_i32_0 = arith.constant 0 : i32
    return %arg1, %c0_i32 : i32, i32
  }
  func.func @transform_1(%arg0: i32, %arg1: i32) -> (i32, i32) {
    %c0_i32 = arith.constant 0 : i32
    %c0_i32_0 = arith.constant 0 : i32
    return %c0_i32, %arg0 : i32, i32
  }
  func.func @transform_2(%arg0: i32, %arg1: i32) -> (i32, i32) {
    %c0_i32 = arith.constant 0 : i32
    %c0_i32_0 = arith.constant 0 : i32
    return %c0_i32, %arg0 : i32, i32
  }
  func.func @transform_3(%arg0: i32, %arg1: i32) -> (i32, i32) {
    %c0_i32 = arith.constant 0 : i32
    %c0_i32_0 = arith.constant 0 : i32
    %c0_i32_1 = arith.constant 0 : i32
    return %c0_i32, %c0_i32_0 : i32, i32
  }
  func.func @transform_4(%arg0: i32, %arg1: i32) -> (i32, i32) {
    %c0_i32 = arith.constant 0 : i32
    %c0_i32_0 = arith.constant 0 : i32
    %c0_i32_1 = arith.constant 0 : i32
    return %c0_i32, %c0_i32_0 : i32, i32
  }
  func.func @transform_5(%arg0: i32, %arg1: i32) -> (i32, i32) {
    %c0_i32 = arith.constant 0 : i32
    return %arg1, %arg0 : i32, i32
  }
}

</mosaic_0001>

<bundles_post_ra>
// kernel: tpu_custom_call.1
= control target key start
LH: loop header
LB: loop body
LE: loop exit
PB: predicated region body
PF: predicated region fallthrough
CT: control target
= control target key end

     0   :  { %s1201_s0 = inlined_call_operand.hbm [shape: f32[16,64], index: 0, kind: input, shape index: {}]   ;;  %s1202_s1 = inlined_call_operand.hbm [shape: f32[64,256], index: 1, kind: input, shape index: {}]   ;;  %s1203_s2 = inlined_call_operand.hbm [shape: f32[1,256], index: 2, kind: input, shape index: {}]   ;;  %s1204_s3 = inlined_call_operand.vmem [shape: f32[1,64], index: 3, kind: input, shape index: {}]   ;;  %s1205_s4 = inlined_call_operand.vmem [shape: f32[1,64], index: 4, kind: input, shape index: {}]   ;;  %s1206_s5 = inlined_call_operand.hbm [shape: f32[16,256], index: 5, kind: output, shape index: {}]  }
   0x1   :  { %1209 = sst [smem:[#allocation12_spill]] %s1201_s0 }
   0x2   :  { %1210 = sst [smem:[#allocation13_spill]] %s1202_s1 }
   0x3   :  { %10 = vsyncpa [#allocation3], 0 }
   0x4   :  { %11 = vsyncpa [#allocation6], 0 }
   0x5   :  { %13 = vsyncpa [#allocation6 + $0x1], 0 }
   0x6   :  { %14 = vsyncpa [#allocation4], 0 }
   0x7   :  { %16 = vsyncpa [#allocation4 + $0x1], 0  ;;  %s970_s18 = smov 0   ;;  %s972_s19 = smov 0  }
   0x8   :  { %s974_s20 = smov 0   ;;  %s976_s21 = smov 0  }
   0x9   :  { %s978_s22 = smov 0   ;;  %s980_s23 = smov 0  }
   0xa LB: > { %s34_s24 = sadd.s32 1, %s925_s22  ;;  %s67_s25 = sadd.s32 1, %s917_s20  ;;  %s929_s23 = sphi %s980_s23, %s22_s23   ;;  %s925_s22 = sphi %s978_s22, %s1225_s22   ;;  %s921_s21 = sphi %s976_s21, %s1224_s21   ;;  %s917_s20 = sphi %s974_s20, %s1223_s20   ;;  %s913_s19 = sphi %s972_s19, %s1222_s19   ;;  %s909_s18 = sphi %s970_s18, %s1221_s18  }
   0xb   : > { %p36_p0 = scmp.ge.s32.totalorder %s34_s24, 2  ;;  %p74_p1 = scmp.ne.s32.totalorder %s917_s20, %s913_s19 }
   0xc   : > { %p75_p2 = scmp.eq.s32.totalorder %s929_s23, 0  ;;  %p633_p4 = scmp.ge.s32.totalorder %s929_s23, 2 }
   0xd   : > { %s1227_s24 = smov (%p36_p0, %s34_s24), 0  ;;  %p680_p6 = scmp.lt.s32.totalorder %s929_s23, 2 }
   0xe   : > { %p1010_p3 = por %p75_p2, %p74_p1  ;;  %s64_s27 = ssub.s32 %s925_s22, %s1227_s24 }
   0xf   : > { %p65_p5 = scmp.eq.s32.totalorder %s64_s27, 0  ;;  %s223_s28 = sand.u32 1, %s929_s23  }
  0x10   : > { %s225_s29 = sand.u32 1, %s917_s20   ;;  %s635_s7 = sshll.u32 %s925_s22, 3 }
  0x11   : > { %s1021_s30 = scalar_select %p65_p5, %s917_s20, %s67_s25  }
  0x12   : > { %s634_s6 = sshll.u32 %s225_s29, 6  ;;  %s1212_s1 = sld [smem:[#allocation13_spill]] }
  0x13   : > { %s227_s11 = scalar_lea.vmem [#allocation5], %s634_s6  ;;  %p1031_p7 = pnand %p680_p6, %p1010_p3 }
  0x14   : > { %s234_s12 = sshll.u32 %s227_s11, 4  ;;  %s1035_s15 = scalar_lea.sflag [#allocation6], %s223_s28  ;;  %s235_s12 = int_to_ptr.vmem [resolvable:$true] %s234_s12 }
  0x15   : > { %s931_s16 = smov 256   ;;  %s1207_s17 = smov 128  }
  0x16   : > { %s1208_s25 = smov 8   ;;  %s1043_s27 = sadd.s32 4294967295, %s929_s23  }
  0x17   : > { %s630_s26 = sadd.s32 4294967294, %s929_s23   ;;  %p80_p8 = scmp.ne.s32.totalorder %s913_s19, %s909_s18 }
  0x18   : > { %s231_s10 = scalar_lea.hbm %s1212_s1, %s635_s7  ;;  %p81_p9 = scmp.eq.s32.totalorder %s1043_s27, 0 }
  0x19   : > { %s232_s13 = sshll.u32 %s231_s10, 4  ;;  %p174_p10 = scmp.eq.s32.totalorder %s1043_s27, 1  ;;  %s233_s13 = int_to_ptr.hbm [resolvable:$true] %s232_s13 }
  0x1a   : > { %671 = dma.hbm_to_vmem [thread:$0]  (!%p1031_p7), %s233_s13, 1024, %s235_s12, %s1035_s15, %s931_s16, %s1207_s17, %s1208_s25  }
  0x1b   : > { %p180_p11 = scmp.eq.s32.totalorder %s630_s26, 1  ;;  %p1052_p12 = por %p81_p9, %p80_p8 }
  0x1c   : > { %p631_p13 = scmp.ge.s32.totalorder %s929_s23, 1  ;;  %p1060_p0 = por %p174_p10, %p74_p1 }
  0x1d   : > { %p1064_p2 = por %p180_p11, %p80_p8  ;;  %p187_p3 = scmp.lt.s32.totalorder %s929_s23, 3 }
  0x1e   : > { %s1217_s0 = sld [smem:[#allocation12_spill]]  ;;  %s934_s12 = smov [#allocation2]  }
  0x1f   : > { %p1072_p5 = pnand %p631_p13, %p187_p3  ;;  %s203_s13 = sshll.u32 %s934_s12, 4  ;;  %s204_s13 = int_to_ptr.vmem [resolvable:$true] %s203_s13 }
  0x20   : > { %s250_s17 = scalar_lea.hbm %s1203_s2, %s925_s22  ;;  %s247_s8 = scalar_lea.vmem [#allocation7], %s225_s29 }
  0x21   : > { %p664_p1 = pneg %p1072_p5  ;;  %s254_s9 = sshll.u32 %s247_s8, 4  ;;  %s255_s9 = int_to_ptr.vmem [resolvable:$true] %s254_s9 }
  0x22   : > { %s252_s25 = sshll.u32 %s250_s17, 4  ;;  %s1220_s1 = smov 128   ;;  %s253_s25 = int_to_ptr.hbm [resolvable:$true] %s252_s25 }
  0x23   : > { %p665_p6 = pnand %p664_p1, %p81_p9  ;;  %263 = sbr.rel (%p1072_p5) target bundleno = 701 (0x2bd), region = 40 }
  0x24   : > { %s201_s10 = sshll.u32 %s1217_s0, 4  ;;  %s1219_s0 = smov 8   ;;  %s202_s10 = int_to_ptr.hbm [resolvable:$true] %s201_s10 }
  0x25   : > { %667 = dma.hbm_to_vmem [thread:$0]  (!%p665_p6), %s202_s10, 256, %s204_s13, [#allocation3], %s1220_s1, %s1220_s1, %s1219_s0  }
  0x26   : > { %674 = dma.hbm_to_vmem [thread:$0]  (!%p1031_p7), %s253_s25, 16, %s255_s9, %s1035_s15  }
  0x28   : > { %896 = dma.done.wait (%p81_p9), [#allocation3], 256  }
  0x29   : > { %898 = vsyncadd (%p81_p9), [#allocation3], 4294967040  ;;  %s270_s29 = sand.u32 1, %s1043_s27   ;;  %s1100_s17 = sand.u32 1, %s913_s19  }
  0x2a   : > { %s638_s12 = sshll.u32 %s1100_s17, 6  ;;  %s271_s0 = scalar_lea.sflag [#allocation6], %s270_s29 }
  0x2b   : > { %s274_s1 = scalar_lea.vmem [#allocation5], %s638_s12 }
  0x2c   : > { %900 = dma.done.wait (%p1052_p12), %s271_s0, 1040  }
  0x2d   : > { %902 = vsyncadd (%p1052_p12), %s271_s0, 4294966256  ;;  %v326_v0 = vld [vmem:[%s274_s1 + $0x38] sm:$0xff]  ;;  %v325_v1 = vld [vmem:[%s274_s1 + $0x30] sm:$0xff]  ;;  %s283_s14 = scalar_lea.vmem [#allocation7], %s1100_s17  ;;  %vm331_vm0 = vcmask 523264   ;;  %s935_s15 = smov 64  }
  0x2e   : > { %346 = vmatpush.msra.mxu0 %v326_v0  ;;  %646 = vmatpush.msra.mxu1 %v326_v0  ;;  %v324_v2 = vld [vmem:[%s274_s1 + $0x28] sm:$0xff]  ;;  %v323_v3 = vld [vmem:[%s274_s1 + $0x20] sm:$0xff]  ;;  %v322_v4 = vld [vmem:[%s274_s1 + $0x18] sm:$0xff]  ;;  %v936_v17 = vmov 64.0   ;;  %s639_s11 = sshll.u32 %s1100_s17, 4  ;;  %s643_s13 = sshll.u32 %s921_s21, 3 }
  0x2f   : > { %v321_v5 = vld [vmem:[%s274_s1 + $0x10] sm:$0xff]  ;;  %v320_v6 = vld [vmem:[%s274_s1 + $0x8] sm:$0xff]  ;;  %v319_v7 = vld [vmem:[%s274_s1] sm:$0xff]  ;;  %743 = vrcp.f32 %v936_v17  ;;  %s512_s8 = scalar_lea.hbm %s1206_s5, %s643_s13  ;;  %s314_s9 = scalar_lea.vmem [#allocation8], %s639_s11 }
  0x30   : > { %347 = vmatpush.msra.mxu0 %v325_v1  ;;  %647 = vmatpush.msra.mxu1 %v325_v1  ;;  %v317_v8 = vld [vmem:[#allocation2] sm:$0xff]  ;;  %v318_v9 = vld [vmem:[#allocation2 + $0x8] sm:$0xff]  ;;  %s513_s21 = sshll.u32 %s314_s9, 4  ;;  %s515_s29 = sshll.u32 %s512_s8, 4  ;;  %s514_s21 = int_to_ptr.vmem [resolvable:$true] %s513_s21  ;;  %s516_s29 = int_to_ptr.hbm [resolvable:$true] %s515_s29 }
  0x31   : > { %v740_v10 = vld [vmem:[%s283_s14] ss:$0 sm:$0xff]  ;;  %s499_s12 = scalar_lea.sflag [#allocation4], %s1100_s17  ;;  %s857_s0 = sshra.s32 %s516_s29, 4  ;;  %s858_s0 = int_to_ptr.hbm [resolvable:$true] %s857_s0 }
  0x32   : > { %348 = vmatpush.msra.mxu0 %v324_v2  ;;  %648 = vmatpush.msra.mxu1 %v324_v2  ;;  %v1134_v41 = vld [vmem:[%s1205_s4] ss:$0 sm:$0xff]  ;;  %s859_s1 = scalar_lea.hbm %s858_s0, 16  ;;  %s863_s25 = scalar_lea.hbm %s1206_s5, 32 }
  0x33   : > { %v1148_v51 = vld [vmem:[%s1204_s3] ss:$0 sm:$0xff]  ;;  %p860_p7 = scmp.ne.s32.totalorder %s858_s0, %s859_s1  ;;  %p864_p10 = scmp.lt.s32.totalorder %s858_s0, %s1206_s5 }
  0x34   : > { %349 = vmatpush.msra.mxu0 %v323_v3  ;;  %649 = vmatpush.msra.mxu1 %v323_v3  ;;  %p865_p11 = scmp.lt.s32.totalorder %s863_s25, %s859_s1 }
  0x35   : > { %v744_v18 = vpop.eup %743  ;;  %p861_p8 = pnand %p860_p7, %p1060_p0 }
  0x36   : > { %350 = vmatpush.msra.mxu0 %v322_v4  ;;  %650 = vmatpush.msra.mxu1 %v322_v4  ;;  %v370_v19 = vmul.f32 64.0, %v744_v18  ;;  %vm374_vm1 = vweird.f32 %v744_v18  ;;  %p866_p12 = por %p865_p11, %p864_p10 }
  0x37   : > { %p862_p9 = pneg %p861_p8 }
  0x38   : > { %351 = vmatpush.msra.mxu0 %v321_v5  ;;  %651 = vmatpush.msra.mxu1 %v321_v5  ;;  %v371_v20 = vsub.f32 1.0, %v370_v19 }
  0x39   : > { %p867_p13 = pnand %p866_p12, %p862_p9 }
  0x3a   : > { %352 = vmatpush.msra.mxu0 %v320_v6  ;;  %652 = vmatpush.msra.mxu1 %v320_v6  ;;  %v372_v21 = vmul.f32 %v744_v18, %v371_v20 }
  0x3c   : > { %353 = vmatpush.msra.mxu0 %v319_v7  ;;  %653 = vmatpush.msra.mxu1 %v319_v7  ;;  %v373_v22 = vadd.f32 %v744_v18, %v372_v21 }
  0x3d   : > { %640 = vmatmul.msk.f32.vlgmr.msra.gmra.mxu0 %vm331_vm0, %v317_v8  ;;  %641 = vmatmul.msk.f32.vlgmr.msra.gmra.mxu1 %vm331_vm0, %v318_v9 }
  0x3e   : > { %v375_v24 = vsel %vm374_vm1, %v744_v18, %v373_v22 }
  0xba   : > { %v355_v11 = vpop.f32.mrf.mxu0  ;;  %v358_v13 = vpop.f32.mrf.mxu1 }
  0xbb   : > { %v356_v12 = vadd.f32 %v740_v10, %v355_v11  ;;  %v359_v15 = vadd.f32 %v740_v10, %v358_v13 }
  0xbd   : > { %426 = vrot.lane.b32.xlu0 %v356_v12, %s935_s15  ;;  %v363_v14 = vsel %vm331_vm0, %v356_v12, 0.0  ;;  %v366_v16 = vsel %vm331_vm0, %v359_v15, 0.0 }
  0xbe   : > { %364 = vadd.xlane.f32.xlu2 %v363_v14 }
  0xc5   : > { %428 = vrot.lane.b32.xlu0 %v359_v15, %s935_s15 }
  0xc6   : > { %367 = vadd.xlane.f32.xlu2 %v366_v16 }
 0x12f   : > { %v427_v23 = vpop.permute.xlu0 %426 }
 0x130   : > { %v432_v25 = vsel %vm331_vm0, %v427_v23, 0.0 }
 0x131   : > { %433 = vadd.xlane.f32.xlu1 %v432_v25  ;;  %v365_v26 = vpop.xlane.xlu2 %364 }
 0x132   : > { %v376_v27 = vmul.f32 %v375_v24, %v365_v26 }
 0x134   : > { %v1115_v28 = vsub.f32 %v356_v12, %v376_v27 }
 0x136   : > { %v380_v29 = vmul.f32 %v1115_v28, %v1115_v28 }
 0x137   : > { %v429_v30 = vpop.permute.xlu0 %428 }
 0x138   : > { %v435_v31 = vsel %vm331_vm0, %v429_v30, 0.0  ;;  %v382_v32 = vsel %vm331_vm0, %v380_v29, 0.0 }
 0x139   : > { %436 = vadd.xlane.f32.xlu1 %v435_v31  ;;  %383 = vadd.xlane.f32.xlu2 %v382_v32  ;;  %v368_v42 = vpop.xlane.xlu2 %367 }
 0x13a   : > { %v377_v43 = vmul.f32 %v375_v24, %v368_v42 }
 0x13c   : > { %v1138_v44 = vsub.f32 %v359_v15, %v377_v43 }
 0x13e   : > { %v381_v45 = vmul.f32 %v1138_v44, %v1138_v44 }
 0x140   : > { %v385_v46 = vsel %vm331_vm0, %v381_v45, 0.0 }
 0x1a4   : > { %v434_v33 = vpop.xlane.xlu1 %433 }
 0x1a5   : > { %v438_v34 = vmul.f32 %v434_v33, %v375_v24 }
 0x1a7   : > { %v1121_v35 = vsub.f32 %v356_v12, %v438_v34 }
 0x1a9   : > { %v442_v36 = vmul.f32 %v1121_v35, %v1121_v35 }
 0x1ab   : > { %446 = vrot.lane.b32.xlu0 %v442_v36, %s935_s15 }
 0x1ac   : > { %v437_v37 = vpop.xlane.xlu1 %436  ;;  %v384_v52 = vpop.xlane.xlu2 %383 }
 0x1ad   : > { %v439_v38 = vmul.f32 %v437_v37, %v375_v24  ;;  %v388_v53 = vmul.f32 %v384_v52, %v375_v24 }
 0x1af   : > { %v1126_v39 = vsub.f32 %v359_v15, %v439_v38  ;;  %v390_v54 = vadd.f32 1e-05, %v388_v53 }
 0x1b1   : > { %v443_v40 = vmul.f32 %v1126_v39, %v1126_v39  ;;  %745 = vrsqrt.f32 %v390_v54  ;;  %vm398_vm3 = vweird.f32 %v390_v54 }
 0x1b3   : > { %448 = vrot.lane.b32.xlu1 %v443_v40, %s935_s15 }
 0x1b7   : > { %v746_v58 = vpop.eup %745 }
 0x1b8   : > { %v393_v59 = vmul.f32 %v746_v58, %v390_v54  ;;  %vm399_vm2 = vweird.f32 %v746_v58 }
 0x1b9   : > { %vm400_vm4 = vmor %vm398_vm3, %vm399_vm2 }
 0x1ba   : > { %v394_v60 = vmul.f32 %v746_v58, %v393_v59 }
 0x1bb   : > { %489 = vrot.lane.b32.xlu1 %v1134_v41, %s935_s15 }
 0x1bc   : > { %v395_v1 = vmul.f32 0.5, %v394_v60 }
 0x1be   : > { %v396_v3 = vsub.f32 1.5, %v395_v1 }
 0x1c0   : > { %v397_v9 = vmul.f32 %v746_v58, %v396_v3 }
 0x1c2   : > { %v401_v13 = vsel %vm400_vm4, %v746_v58, %v397_v9 }
 0x1c3   : > { %v412_v18 = vmul.f32 %v401_v13, %v1115_v28 }
 0x1c5   : > { %v417_v25 = vmul.f32 %v1148_v51, %v412_v18 }
 0x1c7   : > { %v422_v33 = vadd.f32 %v1134_v41, %v417_v25 }
 0x1d5   : > { %386 = vadd.xlane.f32.xlu0 %v385_v46 }
 0x21d   : > { %v447_v47 = vpop.permute.xlu0 %446 }
 0x21e   : > { %v452_v48 = vsel %vm331_vm0, %v447_v47, 0.0 }
 0x21f   : > { %453 = vadd.xlane.f32.xlu2 %v452_v48 }
 0x225   : > { %v449_v49 = vpop.permute.xlu1 %448 }
 0x226   : > { %v455_v50 = vsel %vm331_vm0, %v449_v49, 0.0 }
 0x227   : > { %456 = vadd.xlane.f32.xlu2 %v455_v50 }
 0x22d   : > { %v490_v28 = vpop.permute.xlu1 %489 }
 0x23f   : > { %484 = vrot.lane.b32.xlu2 %v1148_v51, %s935_s15 }
 0x248   : > { %v387_v55 = vpop.xlane.xlu0 %386 }
 0x249   : > { %v389_v56 = vmul.f32 %v387_v55, %v375_v24 }
 0x24b   : > { %v391_v57 = vadd.f32 1e-05, %v389_v56 }
 0x24d   : > { %747 = vrsqrt.f32 %v391_v57  ;;  %vm408_vm9 = vweird.f32 %v391_v57 }
 0x253   : > { %v748_v62 = vpop.eup %747 }
 0x254   : > { %v403_v2 = vmul.f32 %v748_v62, %v391_v57  ;;  %vm409_vm6 = vweird.f32 %v748_v62 }
 0x255   : > { %vm410_vm10 = vmor %vm408_vm9, %vm409_vm6 }
 0x256   : > { %v404_v4 = vmul.f32 %v748_v62, %v403_v2 }
 0x258   : > { %v405_v10 = vmul.f32 0.5, %v404_v4 }
 0x25a   : > { %v406_v14 = vsub.f32 1.5, %v405_v10 }
 0x25c   : > { %v407_v19 = vmul.f32 %v748_v62, %v406_v14 }
 0x25e   : > { %v411_v27 = vsel %vm410_vm10, %v748_v62, %v407_v19 }
 0x25f   : > { %v413_v32 = vmul.f32 %v411_v27, %v1138_v44 }
 0x261   : > { %v418_v38 = vmul.f32 %v1148_v51, %v413_v32 }
 0x263   : > { %v423_v43 = vadd.f32 %v1134_v41, %v418_v38 }
 0x292   : > { %v454_v61 = vpop.xlane.xlu2 %453 }
 0x293   : > { %v458_v63 = vmul.f32 %v454_v61, %v375_v24 }
 0x295   : > { %v460_v0 = vadd.f32 1e-05, %v458_v63 }
 0x297   : > { %749 = vrsqrt.f32 %v460_v0  ;;  %vm468_vm7 = vweird.f32 %v460_v0 }
 0x29a   : > { %v457_v5 = vpop.xlane.xlu2 %456 }
 0x29b   : > { %v459_v6 = vmul.f32 %v457_v5, %v375_v24 }
 0x29d   : > { %v750_v7 = vpop.eup %749  ;;  %v461_v8 = vadd.f32 1e-05, %v459_v6 }
 0x29e   : > { %v463_v11 = vmul.f32 %v750_v7, %v460_v0  ;;  %vm469_vm5 = vweird.f32 %v750_v7 }
 0x29f   : > { %751 = vrsqrt.f32 %v461_v8  ;;  %vm470_vm8 = vmor %vm468_vm7, %vm469_vm5  ;;  %vm478_vm12 = vweird.f32 %v461_v8 }
 0x2a0   : > { %v464_v12 = vmul.f32 %v750_v7, %v463_v11 }
 0x2a2   : > { %v465_v15 = vmul.f32 0.5, %v464_v12  ;;  %v485_v24 = vpop.permute.xlu2 %484 }
 0x2a4   : > { %v466_v16 = vsub.f32 1.5, %v465_v15 }
 0x2a5   : > { %v752_v17 = vpop.eup %751 }
 0x2a6   : > { %v473_v20 = vmul.f32 %v752_v17, %v461_v8  ;;  %v467_v21 = vmul.f32 %v750_v7, %v466_v16  ;;  %vm479_vm11 = vweird.f32 %v752_v17 }
 0x2a7   : > { %vm480_vm13 = vmor %vm478_vm12, %vm479_vm11 }
 0x2a8   : > { %v474_v22 = vmul.f32 %v752_v17, %v473_v20  ;;  %v471_v23 = vsel %vm470_vm8, %v750_v7, %v467_v21 }
 0x2a9   : > { %v482_v26 = vmul.f32 %v471_v23, %v1121_v35 }
 0x2aa   : > { %v475_v29 = vmul.f32 0.5, %v474_v22 }
 0x2ab   : > { %v487_v30 = vmul.f32 %v485_v24, %v482_v26 }
 0x2ac   : > { %v476_v31 = vsub.f32 1.5, %v475_v29 }
 0x2ad   : > { %v492_v34 = vadd.f32 %v490_v28, %v487_v30 }
 0x2ae   : > { %v477_v36 = vmul.f32 %v752_v17, %v476_v31 }
 0x2af   : > { %v494_v37 = vsel %vm331_vm0, %v422_v33, %v492_v34 }
 0x2b0   : > { %v481_v35 = vsel %vm480_vm13, %v752_v17, %v477_v36  ;;  %496 = vst [vmem:[%s314_s9] sm:$0xff] %v494_v37 }
 0x2b1   : > { %v483_v40 = vmul.f32 %v481_v35, %v1126_v39 }
 0x2b3   : > { %v488_v42 = vmul.f32 %v485_v24, %v483_v40 }
 0x2b5   : > { %v493_v44 = vadd.f32 %v490_v28, %v488_v42 }
 0x2b7   : > { %v495_v45 = vsel %vm331_vm0, %v423_v43, %v493_v44 }
 0x2b8   : > { %497 = vst [vmem:[%s314_s9 + $0x8] sm:$0xff] %v495_v45 }
 0x2b9   : > { %870 = shalt.err (!%p867_p13)
}
 0x2ba   : > { %s937_s17 = smov 128   ;;  %s938_s10 = smov 256  }
 0x2bb   : > { %s939_s11 = smov 8  }
 0x2bc   : > { %662 = dma.vmem_to_hbm [thread:$0]  (%p1060_p0), %s514_s21, 256, %s516_s29, %s499_s12, %s937_s17, %s938_s10, %s939_s11  }
 0x2bd PF: > { %s530_s13 = sand.u32 1, %s909_s18   ;;  %p676_p3 = pnand %p633_p4, %p1064_p2 }
 0x2be   : > { %s531_s16 = scalar_lea.sflag [#allocation4], %s530_s13 }
 0x2bf   : > { %p677_p5 = pneg %p676_p3 }
 0x2c1   : > { %904 = dma.done.wait (%p677_p5), %s531_s16, 256  }
 0x2c2   : > { %906 = vsyncadd (%p677_p5), %s531_s16, 4294967040  ;;  %s22_s23 = sadd.s32 1, %s929_s23   ;;  %s1221_s18 = smov %s913_s19 }
 0x2c3   : > { %p19_p1 = scmp.ge.s32.totalorder %s22_s23, 4   ;;  %s1222_s19 = smov %s917_s20 }
 0x2c4   : > { %s1223_s20 = smov %s1021_s30  ;;  %s1224_s21 = smov %s925_s22 }
 0x2c5   : > { %s1225_s22 = smov %s1227_s24  ;;  %21 = sbr.rel (!%p19_p1) target bundleno = 10 (0xa), region = 102 }
 0x2ca   :  { %537 = vsyncpa [#allocation3], 1 }
 0x2cb   :  { %539 = vsyncpa [#allocation3 + $0x1], 1 }
 0x2cc   :  { %540 = vsyncpa [#allocation6], 1 }
 0x2cd   :  { %542 = vsyncpa [#allocation6 + $0x1], 1 }
 0x2ce   :  { %543 = vsyncpa [#allocation4], 1 }
 0x2cf   :  { %545 = vsyncpa [#allocation4 + $0x1], 1 }

</bundles_post_ra>
